<compile_context>
chip_gen: v7x
topology: tpu7x:2x2x1
jax: 0.10.0
libtpu: 0.0.40
codegen_flags: <defaults>
</compile_context>

<pallas_src>
import functools

import jax
import jax.numpy as jnp
from jax.experimental import pallas as pl
from jax.experimental.pallas import tpu as pltpu


def _dab_kernel(x1_ref, x2_ref, w1_ref, w2_ref, b_ref, wp_ref, tp_ref,
                out_ref, att_ref):
    """One (batch, pixel-tile) step.  Tiles are channel-major: (C, TILE_P)."""
    x1 = x1_ref[0].astype(jnp.float32)            # (C1, T)
    x2 = x2_ref[0].astype(jnp.float32)            # (C2, T)

    # Conv1x1 branches with BN scale pre-folded into the weights; the two BN
    # shifts are pre-summed into a single (nc, 1) bias (broadcast over lanes).
    z = jnp.dot(w1_ref[...], x1, preferred_element_type=jnp.float32)
    z = z + jnp.dot(w2_ref[...], x2, preferred_element_type=jnp.float32)
    r = jnp.maximum(z + b_ref[...], 0.0)          # (nc, T)

    # Psi head: lane-dense (1, nc) @ (nc, T) -> (1, T); sigmoid on the EUP.
    psi = jnp.dot(wp_ref[...], r, preferred_element_type=jnp.float32)
    att = jax.nn.sigmoid(psi + tp_ref[0])         # (1, T)

    att_ref[0] = att.astype(att_ref.dtype)
    # Re-read the x1 tile from VMEM for the gate (short vreg live range).
    out_ref[0] = (x1_ref[0].astype(jnp.float32) * att).astype(out_ref.dtype)


def _fold_bn(conv_bias, gamma, beta, running_mean, running_var, eps=1e-5):
    """Fold conv bias + inference-mode BatchNorm into (scale, shift)."""
    scale = gamma / jnp.sqrt(running_var + eps)
    shift = (conv_bias - running_mean) * scale + beta
    return scale, shift


@functools.partial(jax.jit, static_argnames=("tile",))
def disagreement_attention_forward(act1, act2, params, *, tile=1024):
    """act1: (N, m1_act, H, W), act2: (N, m2_act, H, W)  [NCHW, as in PyTorch].

    Returns (act1_with_attention (N, m1_act, H, W), attention (N, 1, H, W)).
    """
    N, C1, H, W = act1.shape
    _, C2, _, _ = act2.shape
    HW = H * W

    (w1, s1, t1, w2, s2, t2, wp, sp, tp) = params
    nc = w1.shape[1]

    # Fold BN scales into the conv weights (f32) and combine the shifts.
    w1_f = (w1.astype(jnp.float32) * s1).T                      # (nc, C1)
    w2_f = (w2.astype(jnp.float32) * s2).T                      # (nc, C2)
    bias = (t1 + t2).reshape(nc, 1).astype(jnp.float32)         # (nc, 1)
    wp_f = (wp.astype(jnp.float32) * sp).T                      # (1, nc)
    tp_s = tp.reshape(1).astype(jnp.float32)                    # scalar -> SMEM

    # Channel-major pixel matrices: NCHW -> (N, C, H*W) is a free reshape.
    x1 = act1.reshape(N, C1, HW)
    x2 = act2.reshape(N, C2, HW)
    # TODO(synk): self.resample defaults to nn.Identity(); a non-identity
    # resample (pooling / strided conv / upconv) on act2 is not folded here.

    # Pixel tiling: lane axis must be a multiple of 128; pad if HW doesn't divide.
    tile_p = min(tile, pl.cdiv(HW, 128) * 128)
    hw_pad = pl.cdiv(HW, tile_p) * tile_p
    if hw_pad != HW:
        pad = ((0, 0), (0, 0), (0, hw_pad - HW))
        x1 = jnp.pad(x1, pad)
        x2 = jnp.pad(x2, pad)

    grid = (N, hw_pad // tile_p)

    elt = jnp.dtype(act1.dtype).itemsize
    block_bytes = tile_p * (2 * C1 * elt + C2 * elt + 4)        # x1 + out + x2 + att
    vmem_limit = int(min(64 << 20, max(16 << 20, 6 * block_bytes)))

    out, att = pl.pallas_call(
        _dab_kernel,
        out_shape=(
            jax.ShapeDtypeStruct((N, C1, hw_pad), act1.dtype),
            jax.ShapeDtypeStruct((N, 1, hw_pad), jnp.float32),
        ),
        grid_spec=pltpu.PrefetchScalarGridSpec(
            num_scalar_prefetch=0,
            grid=grid,
            in_specs=[
                pl.BlockSpec((1, C1, tile_p), lambda b, i: (b, 0, i)),   # x1 tile
                pl.BlockSpec((1, C2, tile_p), lambda b, i: (b, 0, i)),   # x2 tile
                pl.BlockSpec((nc, C1), lambda b, i: (0, 0)),             # w1 (scaled)
                pl.BlockSpec((nc, C2), lambda b, i: (0, 0)),             # w2 (scaled)
                pl.BlockSpec((nc, 1), lambda b, i: (0, 0)),              # combined bias
                pl.BlockSpec((1, nc), lambda b, i: (0, 0)),              # psi weights
                pl.BlockSpec(memory_space=pltpu.MemorySpace.SMEM),       # psi bias scalar
            ],
            out_specs=[
                pl.BlockSpec((1, C1, tile_p), lambda b, i: (b, 0, i)),
                pl.BlockSpec((1, 1, tile_p), lambda b, i: (b, 0, i)),
            ],
        ),
        compiler_params=pltpu.CompilerParams(
            dimension_semantics=("parallel", "parallel"),
            vmem_limit_bytes=vmem_limit),
    )(x1, x2, w1_f, w2_f, bias, wp_f, tp_s)

    out = out[:, :, :HW].reshape(N, C1, H, W)
    att = att[:, :, :HW].reshape(N, 1, H, W)
    return out, att


def init_params(key, m1_act, m2_act, n_channels):
    """Deterministic synthetic parameters (kaiming-ish normal conv weights,
    BatchNorm at its PyTorch-default init: gamma=1, beta=0, mean=0, var=1)."""
    k1, k2, k3, kb1, kb2, kb3 = jax.random.split(key, 6)

    def conv_w(k, cin, cout):
        std = (2.0 / cin) ** 0.5
        return jax.random.normal(k, (cin, cout), jnp.float32) * std

    w1 = conv_w(k1, m1_act, n_channels)
    b1 = jax.random.normal(kb1, (n_channels,), jnp.float32) * 0.01
    w2 = conv_w(k2, m2_act, n_channels)
    b2 = jax.random.normal(kb2, (n_channels,), jnp.float32) * 0.01
    wp = conv_w(k3, n_channels, 1)
    bp = jax.random.normal(kb3, (1,), jnp.float32) * 0.01

    ones_nc, zeros_nc = jnp.ones((n_channels,)), jnp.zeros((n_channels,))
    s1, t1 = _fold_bn(b1, ones_nc, zeros_nc, zeros_nc, ones_nc)
    s2, t2 = _fold_bn(b2, ones_nc, zeros_nc, zeros_nc, ones_nc)
    sp, tp = _fold_bn(bp, jnp.ones((1,)), jnp.zeros((1,)),
                      jnp.zeros((1,)), jnp.ones((1,)))

    # scale/shift vectors as (1, C) rows (wrapper folds them further).
    return (w1, s1[None, :], t1[None, :],
            w2, s2[None, :], t2[None, :],
            wp, sp[None, :], tp[None, :])


def _reference(act1, act2, params):
    """Pure-JAX reference for correctness checking (unfused, channel-last)."""
    (w1, s1, t1, w2, s2, t2, wp, sp, tp) = params
    N, C1, H, W = act1.shape
    x1 = jnp.transpose(act1, (0, 2, 3, 1)).reshape(-1, C1)
    x2 = jnp.transpose(act2, (0, 2, 3, 1)).reshape(-1, act2.shape[1])
    z1 = x1 @ w1 * s1 + t1
    z2 = x2 @ w2 * s2 + t2
    r = jnp.maximum(z1 + z2, 0.0)
    att = jax.nn.sigmoid(r @ wp * sp + tp)
    out = x1 * att
    out = jnp.transpose(out.reshape(N, H, W, C1), (0, 3, 1, 2))
    att = jnp.transpose(att.reshape(N, H, W, 1), (0, 3, 1, 2))
    return out, att


if __name__ == "__main__":
    key = jax.random.PRNGKey(0)
    k_a1, k_a2, k_p = jax.random.split(key, 3)

    N, m1_act, m2_act, H, W = 2, 4, 4, 16, 16
    n_channels = max(m1_act, m2_act)   # default: n_channels == -1 -> max(m1, m2)

    act1 = jax.random.normal(k_a1, (N, m1_act, H, W), jnp.float32)
    act2 = jax.random.normal(k_a2, (N, m2_act, H, W), jnp.float32)
    params = init_params(k_p, m1_act, m2_act, n_channels)

    out, att = disagreement_attention_forward(act1, act2, params, tile=1024)
    jax.block_until_ready((out, att))

    ref_out, ref_att = _reference(act1, act2, params)
    assert out.shape == (N, m1_act, H, W) and att.shape == (N, 1, H, W)
    assert jnp.allclose(out, ref_out, atol=1e-5, rtol=1e-5)
    assert jnp.allclose(att, ref_att, atol=1e-5, rtol=1e-5)

    print("KERNEL_OK")
</pallas_src>

<mosaic_0001>
module attributes {stable_mosaic.version = 11 : i64} {
  func.func @_dab_kernel(%arg0: i32, %arg1: i32, %arg2: memref<1x4x256xf32, #tpu.memory_space<vmem>>, %arg3: memref<1x4x256xf32, #tpu.memory_space<vmem>>, %arg4: memref<4x4xf32, #tpu.memory_space<vmem>>, %arg5: memref<4x4xf32, #tpu.memory_space<vmem>>, %arg6: memref<4x1xf32, #tpu.memory_space<vmem>>, %arg7: memref<1x4xf32, #tpu.memory_space<vmem>>, %arg8: memref<1xf32, #tpu.memory_space<smem>>, %arg9: memref<1x4x256xf32, #tpu.memory_space<vmem>>, %arg10: memref<1x1x256xf32, #tpu.memory_space<vmem>>) attributes {dimension_semantics = [#tpu.dimension_semantics<parallel>, #tpu.dimension_semantics<parallel>], iteration_bounds = array<i64: 2, 1>, scalar_prefetch = 0 : i64, scratch_operands = 0 : i64, tpu.core_type = #tpu.core_type<tc>, window_params = [{transform_indices = @transform_0, window_bounds = array<i64: 1, 4, 256>}, {transform_indices = @transform_1, window_bounds = array<i64: 1, 4, 256>}, {pipeline_mode = #tpu.pipeline_mode<synchronous>, transform_indices = @transform_2, window_bounds = array<i64: 4, 4>}, {pipeline_mode = #tpu.pipeline_mode<synchronous>, transform_indices = @transform_3, window_bounds = array<i64: 4, 4>}, {pipeline_mode = #tpu.pipeline_mode<synchronous>, transform_indices = @transform_4, window_bounds = array<i64: 4, 1>}, {pipeline_mode = #tpu.pipeline_mode<synchronous>, transform_indices = @transform_5, window_bounds = array<i64: 1, 4>}, {transform_indices = @transform_6, window_bounds = array<i64: 1>}, {transform_indices = @transform_7, window_bounds = array<i64: 1, 4, 256>}, {transform_indices = @transform_8, window_bounds = array<i64: 1, 1, 256>}]} {
    %c0 = arith.constant 0 : index
    %c0_0 = arith.constant 0 : index
    %c0_1 = arith.constant 0 : index
    %0 = vector.load %arg2[%c0, %c0_0, %c0_1] : memref<1x4x256xf32, #tpu.memory_space<vmem>>, vector<1x4x256xf32>
    %1 = vector.shape_cast %0 : vector<1x4x256xf32> to vector<4x256xf32>
    %c0_2 = arith.constant 0 : index
    %c0_3 = arith.constant 0 : index
    %c0_4 = arith.constant 0 : index
    %2 = vector.load %arg3[%c0_2, %c0_3, %c0_4] : memref<1x4x256xf32, #tpu.memory_space<vmem>>, vector<1x4x256xf32>
    %3 = vector.shape_cast %2 : vector<1x4x256xf32> to vector<4x256xf32>
    %c0_5 = arith.constant 0 : index
    %c0_6 = arith.constant 0 : index
    %4 = vector.load %arg4[%c0_5, %c0_6] : memref<4x4xf32, #tpu.memory_space<vmem>>, vector<4x4xf32>
    %cst = arith.constant dense<0.000000e+00> : vector<4x256xf32>
    %5 = tpu.matmul %4, %1, %cst {dimension_numbers = #tpu.dot_dimension_numbers<[1], [0], [0], [1], [0, 0, 1, 1], [], []>} : vector<4x4xf32>, vector<4x256xf32>, vector<4x256xf32> -> vector<4x256xf32>
    %c0_7 = arith.constant 0 : index
    %c0_8 = arith.constant 0 : index
    %6 = vector.load %arg5[%c0_7, %c0_8] : memref<4x4xf32, #tpu.memory_space<vmem>>, vector<4x4xf32>
    %cst_9 = arith.constant dense<0.000000e+00> : vector<4x256xf32>
    %7 = tpu.matmul %6, %3, %cst_9 {dimension_numbers = #tpu.dot_dimension_numbers<[1], [0], [0], [1], [0, 0, 1, 1], [], []>} : vector<4x4xf32>, vector<4x256xf32>, vector<4x256xf32> -> vector<4x256xf32>
    %8 = arith.addf %5, %7 : vector<4x256xf32>
    %c0_10 = arith.constant 0 : index
    %c0_11 = arith.constant 0 : index
    %9 = vector.load %arg6[%c0_10, %c0_11] : memref<4x1xf32, #tpu.memory_space<vmem>>, vector<4x1xf32>
    %10 = vector.broadcast %9 : vector<4x1xf32> to vector<4x256xf32>
    %11 = arith.addf %8, %10 : vector<4x256xf32>
    %cst_12 = arith.constant 0.000000e+00 : f32
    %12 = vector.broadcast %cst_12 : f32 to vector<4x256xf32>
    %13 = arith.maximumf %11, %12 : vector<4x256xf32>
    %c0_13 = arith.constant 0 : index
    %c0_14 = arith.constant 0 : index
    %14 = vector.load %arg7[%c0_13, %c0_14] : memref<1x4xf32, #tpu.memory_space<vmem>>, vector<1x4xf32>
    %cst_15 = arith.constant dense<0.000000e+00> : vector<1x256xf32>
    %15 = tpu.matmul %14, %13, %cst_15 {dimension_numbers = #tpu.dot_dimension_numbers<[1], [0], [0], [1], [0, 0, 1, 1], [], []>} : vector<1x4xf32>, vector<4x256xf32>, vector<1x256xf32> -> vector<1x256xf32>
    %c0_16 = arith.constant 0 : index
    %16 = memref.load %arg8[%c0_16] : memref<1xf32, #tpu.memory_space<smem>>
    %17 = vector.broadcast %16 : f32 to vector<1x256xf32>
    %18 = arith.addf %15, %17 : vector<1x256xf32>
    %19 = arith.negf %18 : vector<1x256xf32>
    %20 = math.exp %19 : vector<1x256xf32>
    %cst_17 = arith.constant 1.000000e+00 : f32
    %21 = vector.broadcast %cst_17 : f32 to vector<1x256xf32>
    %22 = arith.addf %21, %20 : vector<1x256xf32>
    %23 = arith.divf %21, %22 : vector<1x256xf32>
    %c0_18 = arith.constant 0 : index
    %c0_19 = arith.constant 0 : index
    %c0_20 = arith.constant 0 : index
    %24 = vector.load %arg10[%c0_18, %c0_19, %c0_20] : memref<1x1x256xf32, #tpu.memory_space<vmem>>, vector<1x1x256xf32>
    %25 = vector.shape_cast %24 : vector<1x1x256xf32> to vector<1x256xf32>
    %26 = vector.shape_cast %23 : vector<1x256xf32> to vector<1x1x256xf32>
    tpu.vector_store %arg10[%c0_18, %c0_19, %c0_20], %26 {strides = array<i32>} : memref<1x1x256xf32, #tpu.memory_space<vmem>>, vector<1x1x256xf32>,
    %c0_21 = arith.constant 0 : index
    %c0_22 = arith.constant 0 : index
    %c0_23 = arith.constant 0 : index
    %27 = vector.load %arg2[%c0_21, %c0_22, %c0_23] : memref<1x4x256xf32, #tpu.memory_space<vmem>>, vector<1x4x256xf32>
    %28 = vector.shape_cast %27 : vector<1x4x256xf32> to vector<4x256xf32>
    %29 = vector.broadcast %23 : vector<1x256xf32> to vector<4x256xf32>
    %30 = arith.mulf %28, %29 : vector<4x256xf32>
    %c0_24 = arith.constant 0 : index
    %c0_25 = arith.constant 0 : index
    %c0_26 = arith.constant 0 : index
    %31 = vector.load %arg9[%c0_24, %c0_25, %c0_26] : memref<1x4x256xf32, #tpu.memory_space<vmem>>, vector<1x4x256xf32>
    %32 = vector.shape_cast %31 : vector<1x4x256xf32> to vector<4x256xf32>
    %33 = vector.shape_cast %30 : vector<4x256xf32> to vector<1x4x256xf32>
    tpu.vector_store %arg9[%c0_24, %c0_25, %c0_26], %33 {strides = array<i32>} : memref<1x4x256xf32, #tpu.memory_space<vmem>>, vector<1x4x256xf32>,
    return
  }
  func.func @transform_0(%arg0: i32, %arg1: i32) -> (i32, i32, i32) {
    %c0_i32 = arith.constant 0 : i32
    %c0_i32_0 = arith.constant 0 : i32
    return %arg0, %c0_i32, %arg1 : i32, i32, i32
  }
  func.func @transform_1(%arg0: i32, %arg1: i32) -> (i32, i32, i32) {
    %c0_i32 = arith.constant 0 : i32
    %c0_i32_0 = arith.constant 0 : i32
    return %arg0, %c0_i32, %arg1 : i32, i32, i32
  }
  func.func @transform_2(%arg0: i32, %arg1: i32) -> (i32, i32) {
    %c0_i32 = arith.constant 0 : i32
    %c0_i32_0 = arith.constant 0 : i32
    %c0_i32_1 = arith.constant 0 : i32
    return %c0_i32, %c0_i32_0 : i32, i32
  }
  func.func @transform_3(%arg0: i32, %arg1: i32) -> (i32, i32) {
    %c0_i32 = arith.constant 0 : i32
    %c0_i32_0 = arith.constant 0 : i32
    %c0_i32_1 = arith.constant 0 : i32
    return %c0_i32, %c0_i32_0 : i32, i32
  }
  func.func @transform_4(%arg0: i32, %arg1: i32) -> (i32, i32) {
    %c0_i32 = arith.constant 0 : i32
    %c0_i32_0 = arith.constant 0 : i32
    %c0_i32_1 = arith.constant 0 : i32
    return %c0_i32, %c0_i32_0 : i32, i32
  }
  func.func @transform_5(%arg0: i32, %arg1: i32) -> (i32, i32) {
    %c0_i32 = arith.constant 0 : i32
    %c0_i32_0 = arith.constant 0 : i32
    %c0_i32_1 = arith.constant 0 : i32
    return %c0_i32, %c0_i32_0 : i32, i32
  }
  func.func @transform_6(%arg0: i32, %arg1: i32) -> i32 {
    %c0_i32 = arith.constant 0 : i32
    %c0_i32_0 = arith.constant 0 : i32
    return %c0_i32 : i32
  }
  func.func @transform_7(%arg0: i32, %arg1: i32) -> (i32, i32, i32) {
    %c0_i32 = arith.constant 0 : i32
    %c0_i32_0 = arith.constant 0 : i32
    return %arg0, %c0_i32, %arg1 : i32, i32, i32
  }
  func.func @transform_8(%arg0: i32, %arg1: i32) -> (i32, i32, i32) {
    %c0_i32 = arith.constant 0 : i32
    %c0_i32_0 = arith.constant 0 : i32
    return %arg0, %c0_i32, %arg1 : i32, i32, i32
  }
}

</mosaic_0001>

<bundles_post_ra>
// kernel: disagreement_attention_forward.1
= control target key start
LH: loop header
LB: loop body
LE: loop exit
PB: predicated region body
PF: predicated region fallthrough
CT: control target
= control target key end

     0   :  { %s1005_s29 = smov 0   ;;  %s1007_s30 = smov 0   ;;  %s1074_s0 = inlined_call_operand.vmem [shape: f32[2,4,256], index: 0, kind: input, shape index: {}]   ;;  %s1075_s1 = inlined_call_operand.vmem [shape: f32[2,4,256], index: 1, kind: input, shape index: {}]   ;;  %s1076_s2 = inlined_call_operand.vmem [shape: f32[4,4], index: 2, kind: input, shape index: {}]   ;;  %s1077_s3 = inlined_call_operand.vmem [shape: f32[4,4], index: 3, kind: input, shape index: {}]   ;;  %s1078_s4 = inlined_call_operand.vmem [shape: f32[4,1], index: 4, kind: input, shape index: {}]   ;;  %s1079_s5 = inlined_call_operand.vmem [shape: f32[1,4], index: 5, kind: input, shape index: {}]   ;;  %s1080_s6 = inlined_call_operand.<no memory space> [shape: f32[1], index: 6, kind: input, shape index: {}]   ;;  %s1081_s7 = inlined_call_operand.vmem [shape: f32[2,4,256], index: 7, kind: output, shape index: {0}]   ;;  %s1082_s8 = inlined_call_operand.vmem [shape: f32[2,1,256], index: 8, kind: output, shape index: {1}]  }
   0x1   :  { %14 = sst [smem:[#allocation2]] %s1080_s6  ;;  %s1009_s9 = smov 0  }
   0x2 LB: > { %s32_s6 = sadd.s32 1, %s948_s30  ;;  %p866_p0 = scmp.ge.s32.totalorder %s952_s9, 1  ;;  %s952_s9 = sphi %s1009_s9, %s20_s9   ;;  %s948_s30 = sphi %s1007_s30, %s1084_s30   ;;  %s944_s29 = sphi %s1005_s29, %s1083_s29  }
   0x3   : > { %p34_p1 = scmp.ge.s32.totalorder %s32_s6, 2  ;;  %p306_p2 = scmp.lt.s32.totalorder %s952_s9, 3 }
   0x5   : > { %s1086_s6 = smov (%p34_p1, %s32_s6), 0  ;;  %p307_p3 = pnand %p866_p0, %p306_p2 }
   0x6   : > { %p366_p4 = scmp.lt.s32.totalorder (!%p307_p3), %s944_s29, 1  ;;  %v954_v0 = vmov (!%p307_p3), 0.0   ;;  %v570_v1 = vld [vmem:[%s1078_s4] sm:$0xf] (!%p307_p3)  ;;  %v955_v2 = vmov (!%p307_p3), 0   ;;  %vm414_vm0 = vcmask (!%p307_p3), 1043456   ;;  %v681_v27 = vlaneseq (!%p307_p3) }
   0x7   : > { %310 = sbr.rel (%p307_p3) target bundleno = 498 (0x1f2), region = 48  ;;  %483 = vmatprep.mubr.f32.mxu0 (!%p307_p3), %v954_v0  ;;  %656 = vmatprep.mubr.f32.mxu1 (!%p307_p3), %v954_v0  ;;  %v407_v7 = vld [vmem:[%s1077_s3] sm:$0xf] (!%p307_p3)  ;;  %vm410_vm1 = vcmask (!%p307_p3), 31744   ;;  %s581_s25 = sld [smem:[#allocation2]] (!%p307_p3) }
   0x8   : > { %919 = vset.pattern.permute.xlu0 (!%p307_p3), %v955_v2  ;;  %v406_v8 = vld [vmem:[%s1076_s2] sm:$0xf] (!%p307_p3)  ;;  %v956_v29 = vmov (!%p307_p3), 1966171168   ;;  %v682_v31 = vshrl.u32 (!%p307_p3), %v681_v27, 7  ;;  %vm695_vm2 = vcmp.lt.s32.totalorder (!%p307_p3), %v681_v27, 256 }
   0x9   : > { %573 = vperm.xlu0 (!%p307_p3), %919, %v570_v1   ;;  %v580_v16 = vld [vmem:[%s1079_s5] sm:$0x1] (!%p307_p3)  ;;  %v679_v30 = vunpack.c.l.s4 (!%p307_p3), %v956_v29 }
   0xa   : > { %v701_v33 = vsub.s32 (!%p307_p3), 0, %v682_v31 }
   0xb   : > { %v680_v32 = vunpack.c.0.s8 (!%p307_p3), %v679_v30 }
   0xd   : > { %v582_v17 = vstv (!%p307_p3), %s581_s25  ;;  %v683_v35 = vsub.s32 (!%p307_p3), %v680_v32, %v682_v31 }
   0xe   : > { %s1088_s29 = smov (!%p366_p4, %s944_s29), 1 }
   0xf   : > { %s1029_s12 = sshll.u32 %s1088_s29, 3  ;;  %s873_s26 = sshll.u32 %s1088_s29, 1 }
  0x10   : > { %s373_s15 = scalar_lea.vmem %s1074_s0, %s1029_s12  ;;  %s383_s18 = scalar_lea.vmem %s1075_s1, %s1029_s12 }
  0x11   : > { %v404_v3 = vld [vmem:[%s373_s15] sm:$0xff]  ;;  %s393_s10 = scalar_lea.vmem %s1081_s7, %s1029_s12  ;;  %s402_s14 = scalar_lea.vmem %s1082_s8, %s873_s26 }
  0x12   : > { %v405_v4 = vld [vmem:[%s383_s18] sm:$0xff]  ;;  %v491_v6 = vcombine.high %v404_v3, %v404_v3 }
  0x13   : > { %v409_v5 = vcombine.high %v405_v4, %v405_v4 }
  0x15   : > { %874 = vmatprep.subr.msk.mxu0 %vm414_vm0, %v409_v5 }
  0x16   : > { %875 = vmatpush1.msk.msra.mxu0 %vm414_vm0, %v405_v4 }
  0x17   : > { %876 = vmatmul.mubr.msk.f32.vlgmr.msra.gmra.mrb[0].mxu0 %vm410_vm1, %v407_v7  ;;  %877 = vmatprep.subr.msk.mxu0 %vm414_vm0, %v491_v6 }
  0x18   : > { %878 = vmatpush1.msk.msra.mxu0 %vm414_vm0, %v404_v3  ;;  %563 = vmatprep.mubr.f32.mxu0 %v954_v0 }
  0x1f   : > { %879 = vmatmul.mubr.msk.f32.vlgmr.msra.gmra.mrb[0].mxu0 %vm410_vm1, %v406_v8 }
  0x88   : > { %v574_v9 = vpop.permute.xlu0 %573 }
  0xf2   : > { %v565_v10 = vpop.f32.mrb[0].mxu0 }
  0xf3   : > { %v576_v11 = vadd.f32 %v574_v9, %v565_v10  ;;  %v567_v12 = vpop.f32.mrb[1].mxu0 }
  0xf4   : > { %v577_v13 = vadd.f32 %v574_v9, %v567_v12 }
  0xf5   : > { %v578_v15 = vmax.f32 %v576_v11, 0.0 }
  0xf6   : > { %v579_v14 = vmax.f32 %v577_v13, 0.0 }
  0xf8   : > { %880 = vmatprep.subr.msk.mxu1 %vm414_vm0, %v579_v14 }
  0xf9   : > { %881 = vmatpush1.msk.msra.mxu1 %vm414_vm0, %v578_v15 }
  0xfa   : > { %882 = vmatmul.mubr.msk.f32.vlgmr.msra.gmra.mrb[0].mxu1 %vm410_vm1, %v580_v16 }
 0x1cd   : > { %v658_v18 = vpop.f32.mrb[0].mxu1 }
 0x1ce   : > { %v659_v19 = vadd.f32 %v658_v18, %v582_v17  ;;  %v660_v20 = vpop.f32.mrb[1].mxu1 }
 0x1cf   : > { %v661_v21 = vadd.f32 %v660_v20, %v582_v17 }
 0x1d0   : > { %v883_v22 = vmul.f32 -1.442695, %v659_v19 }
 0x1d1   : > { %v884_v23 = vmul.f32 -1.442695, %v661_v21 }
 0x1d2   : > { %922 = vpow2.f32 %v883_v22 }
 0x1d3   : > { %924 = vpow2.f32 %v884_v23 }
 0x1dc   : > { %v923_v24 = vpop.eup %922 }
 0x1dd   : > { %v925_v25 = vpop.eup %924  ;;  %v669_v26 = vadd.f32 1.0, %v923_v24 }
 0x1de   : > { %v670_v28 = vadd.f32 1.0, %v925_v25 }
 0x1df   : > { %926 = vrcp.f32 %v669_v26 }
 0x1e0   : > { %928 = vrcp.f32 %v670_v28 }
 0x1e9   : > { %v927_v34 = vpop.eup %926 }
 0x1ea   : > { %v929_v36 = vpop.eup %928  ;;  %v702_v37 = vrot.slane %v927_v34, %v701_v33 }
 0x1eb   : > { %v677_v38 = vcombine.low %v927_v34, %v929_v36  ;;  %v706_v39 = vrot.slane %v929_v36, %v701_v33 }
 0x1ed   : > { %v684_v40 = vrot.slane %v677_v38, %v683_v35  ;;  %v709_v41 = vcombine.low %v702_v37, %v706_v39 }
 0x1ef   : > { %v691_v42 = vrot.slane %v684_v40, %v683_v35  ;;  %v711_v43 = vmul.f32 %v709_v41, %v404_v3 }
 0x1f1   : > { %697 = vst.msk [vmem:[%s402_s14] sm:$0x3] %vm695_vm2, %v691_v42  ;;  %712 = vst [vmem:[%s393_s10] sm:$0xff] %v711_v43 }
 0x1f2 PF: > { %s20_s9 = sadd.s32 1, %s952_s9   ;;  %s1083_s29 = smov %s948_s30 }
 0x1f3   : > { %p17_p5 = scmp.ge.s32.totalorder %s20_s9, 4   ;;  %s1084_s30 = smov %s1086_s6 }
 0x1f5   :  { %19 = sbr.rel (!%p17_p5) target bundleno = 2 (0x2), region = 93 }

</bundles_post_ra>
